<compile_context>
chip_gen: v6e
topology: v6e:2x2x1
jax: 0.10.0
libtpu: 0.0.40
codegen_flags: <defaults>
</compile_context>

<pallas_src>
import math
import functools

import jax
import jax.numpy as jnp
from jax.experimental import pallas as pl
from jax.experimental.pallas import tpu as pltpu


def _round_up(x: int, m: int) -> int:
    return ((x + m - 1) // m) * m


def _linear_kernel_multi_k(x_ref, wt_ref, b_ref, o_ref, acc_ref):
    # x_ref:(tm,tk)  wt_ref:(tk,tn)  b_ref:(1,tn)  o_ref:(tm,tn)  acc_ref:(tm,tn) f32
    k = pl.program_id(2)

    @pl.when(k == 0)
    def _():
        acc_ref[...] = jnp.zeros_like(acc_ref)

    acc_ref[...] += jnp.dot(
        x_ref[...], wt_ref[...], preferred_element_type=jnp.float32
    )

    @pl.when(k == pl.num_programs(2) - 1)
    def _():
        # Bias added exactly once, in the epilogue of the K reduction.
        o_ref[...] = (acc_ref[...] + b_ref[...]).astype(o_ref.dtype)


def _linear_kernel_single_k(x_ref, wt_ref, b_ref, o_ref):
    # Whole K fits in one tile: no scratch accumulator, bias fused into store.
    acc = jnp.dot(x_ref[...], wt_ref[...], preferred_element_type=jnp.float32)
    o_ref[...] = (acc + b_ref[...]).astype(o_ref.dtype)


@functools.partial(jax.jit, static_argnames=("tm", "tn", "tk"))
def linear_pallas(
    x: jax.Array,
    weight_t: jax.Array,   # (in_features, out_features) -- pre-transposed once
    bias: jax.Array,       # (out_features,)
    *,
    tm: int = 256,
    tn: int = 256,
    tk: int = 512,
) -> jax.Array:
    """y = x @ weight_t + bias  (nn.Linear semantics over the last dim of x)."""
    orig_shape = x.shape
    K, N = weight_t.shape

    # Flatten all leading dims into a single batch dim (nn.Linear semantics).
    x2d = x.reshape(-1, K)
    M = x2d.shape[0]

    # --- tile sizes / padded dims: lane-dense, (8,128)-aligned --------------
    tm_eff = min(tm, _round_up(M, 8))
    tn_eff = min(tn, _round_up(N, 128))
    tk_eff = min(tk, _round_up(K, 128))

    M_pad = _round_up(M, tm_eff)
    N_pad = _round_up(N, tn_eff)
    K_pad = _round_up(K, tk_eff)

    # Pad only when actually needed (static shapes -> plain Python branches).
    x_p = x2d if (M_pad == M and K_pad == K) else jnp.pad(
        x2d, ((0, M_pad - M), (0, K_pad - K)))
    wt_p = weight_t if (K_pad == K and N_pad == N) else jnp.pad(
        weight_t, ((0, K_pad - K), (0, N_pad - N)))
    b2d = bias.reshape(1, N)
    b_p = b2d if N_pad == N else jnp.pad(b2d, ((0, 0), (0, N_pad - N)))

    gm, gn, gk = M_pad // tm_eff, N_pad // tn_eff, K_pad // tk_eff

    cost = pl.CostEstimate(
        flops=2 * M_pad * N_pad * K_pad,
        transcendentals=0,
        bytes_accessed=x_p.dtype.itemsize
        * (M_pad * K_pad + K_pad * N_pad + M_pad * N_pad),
    )

    if gk == 1:
        # Fast path: single K step -> 2-D grid, no accumulator scratch.
        out = pl.pallas_call(
            _linear_kernel_single_k,
            out_shape=jax.ShapeDtypeStruct((M_pad, N_pad), x.dtype),
            grid_spec=pltpu.PrefetchScalarGridSpec(
                num_scalar_prefetch=0,
                grid=(gm, gn),
                in_specs=[
                    pl.BlockSpec((tm_eff, K_pad), lambda i, j: (i, 0)),
                    pl.BlockSpec((K_pad, tn_eff), lambda i, j: (0, j)),
                    pl.BlockSpec((1, tn_eff), lambda i, j: (0, j)),
                ],
                out_specs=pl.BlockSpec((tm_eff, tn_eff), lambda i, j: (i, j)),
            ),
            compiler_params=pltpu.CompilerParams(
                dimension_semantics=("parallel", "parallel"),
            ),
            cost_estimate=cost,
        )(x_p, wt_p, b_p)
    else:
        # General path: K reduction as innermost ("arbitrary") grid axis.
        out = pl.pallas_call(
            _linear_kernel_multi_k,
            out_shape=jax.ShapeDtypeStruct((M_pad, N_pad), x.dtype),
            grid_spec=pltpu.PrefetchScalarGridSpec(
                num_scalar_prefetch=0,
                grid=(gm, gn, gk),
                in_specs=[
                    pl.BlockSpec((tm_eff, tk_eff), lambda i, j, k: (i, k)),
                    pl.BlockSpec((tk_eff, tn_eff), lambda i, j, k: (k, j)),
                    pl.BlockSpec((1, tn_eff), lambda i, j, k: (0, j)),
                ],
                out_specs=pl.BlockSpec((tm_eff, tn_eff), lambda i, j, k: (i, j)),
                scratch_shapes=[pltpu.VMEM((tm_eff, tn_eff), jnp.float32)],
            ),
            compiler_params=pltpu.CompilerParams(
                dimension_semantics=("parallel", "parallel", "arbitrary"),
            ),
            cost_estimate=cost,
        )(x_p, wt_p, b_p)

    if M_pad != M or N_pad != N:
        out = out[:M, :N]
    return out.reshape(*orig_shape[:-1], N)


def init_linear_params(key, in_features: int, out_features: int, dtype=jnp.float32):
    """Matches the torch module: xavier_normal_(weight), zeros_(bias).
    Weight stored torch-style (out_features, in_features)."""
    std = math.sqrt(2.0 / (in_features + out_features))
    weight = std * jax.random.normal(key, (out_features, in_features), dtype=dtype)
    bias = jnp.zeros((out_features,), dtype=dtype)
    return weight, bias


def prepare_linear_params(weight: jax.Array, bias: jax.Array):
    """One-time prep: hoist the weight transpose out of the per-call path."""
    return jnp.asarray(weight).T, jnp.asarray(bias)   # (in, out), (out,)


if __name__ == "__main__":
    key = jax.random.PRNGKey(0)
    k_x, k_w = jax.random.split(key)

    batch, seq, in_channels, out_channels = 2, 8, 32, 64
    x = jax.random.normal(k_x, (batch, seq, in_channels), dtype=jnp.float32)
    weight, bias = init_linear_params(k_w, in_channels, out_channels)

    # Transpose weight ONCE (parameter prep), not per forward call.
    weight_t, bias = prepare_linear_params(weight, bias)

    y = linear_pallas(x, weight_t, bias)
    jax.block_until_ready(y)

    # Sanity check against plain-JAX reference.
    y_ref = x @ weight.T + bias
    assert y.shape == (batch, seq, out_channels)
    assert jnp.allclose(y, y_ref, atol=1e-5, rtol=1e-5)

    print("KERNEL_OK")
</pallas_src>

<mosaic_0001>
module attributes {stable_mosaic.version = 11 : i64} {
  func.func @_linear_kernel_single_k(%arg0: i32, %arg1: i32, %arg2: memref<16x128xf32, #tpu.memory_space<vmem>>, %arg3: memref<128x128xf32, #tpu.memory_space<vmem>>, %arg4: memref<1x128xf32, #tpu.memory_space<vmem>>, %arg5: memref<16x128xf32, #tpu.memory_space<vmem>>) attributes {dimension_semantics = [#tpu.dimension_semantics<parallel>, #tpu.dimension_semantics<parallel>], iteration_bounds = array<i64: 1, 1>, scalar_prefetch = 0 : i64, scratch_operands = 0 : i64, tpu.core_type = #tpu.core_type<tc>, window_params = [{transform_indices = @transform_0, window_bounds = array<i64: 16, 128>}, {transform_indices = @transform_1, window_bounds = array<i64: 128, 128>}, {transform_indices = @transform_2, window_bounds = array<i64: 1, 128>}, {transform_indices = @transform_3, window_bounds = array<i64: 16, 128>}]} {
    %c0 = arith.constant 0 : index
    %c0_0 = arith.constant 0 : index
    %0 = vector.load %arg2[%c0, %c0_0] : memref<16x128xf32, #tpu.memory_space<vmem>>, vector<16x128xf32>
    %c0_1 = arith.constant 0 : index
    %c0_2 = arith.constant 0 : index
    %1 = vector.load %arg3[%c0_1, %c0_2] : memref<128x128xf32, #tpu.memory_space<vmem>>, vector<128x128xf32>
    %cst = arith.constant dense<0.000000e+00> : vector<16x128xf32>
    %2 = tpu.matmul %0, %1, %cst {dimension_numbers = #tpu.dot_dimension_numbers<[1], [0], [0], [1], [0, 0, 1, 1], [], []>} : vector<16x128xf32>, vector<128x128xf32>, vector<16x128xf32> -> vector<16x128xf32>
    %c0_3 = arith.constant 0 : index
    %c0_4 = arith.constant 0 : index
    %3 = vector.load %arg4[%c0_3, %c0_4] : memref<1x128xf32, #tpu.memory_space<vmem>>, vector<1x128xf32>
    %4 = vector.broadcast %3 : vector<1x128xf32> to vector<16x128xf32>
    %5 = arith.addf %2, %4 : vector<16x128xf32>
    %c0_5 = arith.constant 0 : index
    %c0_6 = arith.constant 0 : index
    %6 = vector.load %arg5[%c0_5, %c0_6] : memref<16x128xf32, #tpu.memory_space<vmem>>, vector<16x128xf32>
    tpu.vector_store %arg5[%c0_5, %c0_6], %5 {strides = array<i32>} : memref<16x128xf32, #tpu.memory_space<vmem>>, vector<16x128xf32>,
    return
  }
  func.func @transform_0(%arg0: i32, %arg1: i32) -> (i32, i32) {
    %c0_i32 = arith.constant 0 : i32
    %c0_i32_0 = arith.constant 0 : i32
    return %arg0, %c0_i32 : i32, i32
  }
  func.func @transform_1(%arg0: i32, %arg1: i32) -> (i32, i32) {
    %c0_i32 = arith.constant 0 : i32
    %c0_i32_0 = arith.constant 0 : i32
    return %c0_i32, %arg1 : i32, i32
  }
  func.func @transform_2(%arg0: i32, %arg1: i32) -> (i32, i32) {
    %c0_i32 = arith.constant 0 : i32
    %c0_i32_0 = arith.constant 0 : i32
    return %c0_i32, %arg1 : i32, i32
  }
  func.func @transform_3(%arg0: i32, %arg1: i32) -> (i32, i32) {
    %c0_i32 = arith.constant 0 : i32
    return %arg0, %arg1 : i32, i32
  }
}

</mosaic_0001>

<bundles_post_ra>
// kernel: linear_pallas.1
= control target key start
LH: loop header
LB: loop body
LE: loop exit
PB: predicated region body
PF: predicated region fallthrough
CT: control target
= control target key end

     0   :  { %s257_s1 = inlined_call_operand.vmem [shape: f32[128,128], index: 1, kind: input, shape index: {}]   ;;  %s258_s0 = inlined_call_operand.vmem [shape: f32[16,128], index: 0, kind: input, shape index: {}]   ;;  %s259_s2 = inlined_call_operand.vmem [shape: f32[1,128], index: 2, kind: input, shape index: {}]   ;;  %s260_s3 = inlined_call_operand.vmem [shape: f32[16,128], index: 3, kind: output, shape index: {}]  }
   0x1   :  { %v31_v0 = vld [vmem:[%s257_s1 + $0x78] sm:$0xff]  ;;  %v30_v1 = vld [vmem:[%s257_s1 + $0x70] sm:$0xff]  ;;  %v29_v2 = vld [vmem:[%s257_s1 + $0x68] sm:$0xff] }
   0x2   :  { %139 = vmatprep.subr.mxu0 %v31_v0  ;;  %v28_v3 = vld [vmem:[%s257_s1 + $0x60] sm:$0xff]  ;;  %v27_v5 = vld [vmem:[%s257_s1 + $0x58] sm:$0xff]  ;;  %v26_v6 = vld [vmem:[%s257_s1 + $0x50] sm:$0xff] }
   0x3   :  { %140 = vmatpush3.msra.mxu0 %v31_v0  ;;  %v14_v4 = vld [vmem:[%s258_s0] sm:$0xff]  ;;  %v25_v7 = vld [vmem:[%s257_s1 + $0x48] sm:$0xff]  ;;  %v23_v9 = vld [vmem:[%s257_s1 + $0x38] sm:$0xff] }
   0x4   :  { %141 = vmatprep.subr.mxu0 %v30_v1  ;;  %171 = vmatprep.mubr.f32.mxu0 %v14_v4  ;;  %v24_v8 = vld [vmem:[%s257_s1 + $0x40] sm:$0xff]  ;;  %v22_v10 = vld [vmem:[%s257_s1 + $0x30] sm:$0xff]  ;;  %v21_v11 = vld [vmem:[%s257_s1 + $0x28] sm:$0xff] }
   0x5   :  { %142 = vmatpush3.msra.mxu0 %v30_v1  ;;  %v20_v12 = vld [vmem:[%s257_s1 + $0x20] sm:$0xff]  ;;  %v19_v13 = vld [vmem:[%s257_s1 + $0x18] sm:$0xff]  ;;  %v18_v14 = vld [vmem:[%s257_s1 + $0x10] sm:$0xff] }
   0x6   :  { %143 = vmatprep.subr.mxu0 %v29_v2  ;;  %v17_v15 = vld [vmem:[%s257_s1 + $0x8] sm:$0xff]  ;;  %v16_v16 = vld [vmem:[%s257_s1] sm:$0xff] }
   0x7   :  { %144 = vmatpush3.msra.mxu0 %v29_v2  ;;  %v15_v17 = vld [vmem:[%s258_s0 + $0x8] sm:$0xff]  ;;  %v120_v18 = vld [vmem:[%s259_s2] ss:$0 sm:$0xff] }
   0x8   :  { %145 = vmatprep.subr.mxu0 %v28_v3 }
   0x9   :  { %146 = vmatpush3.msra.mxu0 %v28_v3 }
   0xa   :  { %147 = vmatprep.subr.mxu0 %v27_v5 }
   0xb   :  { %148 = vmatpush3.msra.mxu0 %v27_v5 }
   0xc   :  { %149 = vmatprep.subr.mxu0 %v26_v6 }
   0xd   :  { %150 = vmatpush3.msra.mxu0 %v26_v6 }
   0xe   :  { %151 = vmatprep.subr.mxu0 %v25_v7 }
   0xf   :  { %152 = vmatpush3.msra.mxu0 %v25_v7 }
  0x10   :  { %153 = vmatprep.subr.mxu0 %v24_v8 }
  0x11   :  { %154 = vmatpush3.msra.mxu0 %v24_v8 }
  0x12   :  { %155 = vmatprep.subr.mxu0 %v23_v9 }
  0x13   :  { %156 = vmatpush3.msra.mxu0 %v23_v9 }
  0x14   :  { %157 = vmatprep.subr.mxu0 %v22_v10 }
  0x15   :  { %158 = vmatpush3.msra.mxu0 %v22_v10 }
  0x16   :  { %159 = vmatprep.subr.mxu0 %v21_v11 }
  0x17   :  { %160 = vmatpush3.msra.mxu0 %v21_v11 }
  0x18   :  { %161 = vmatprep.subr.mxu0 %v20_v12 }
  0x19   :  { %162 = vmatpush3.msra.mxu0 %v20_v12 }
  0x1a   :  { %163 = vmatprep.subr.mxu0 %v19_v13 }
  0x1b   :  { %164 = vmatpush3.msra.mxu0 %v19_v13 }
  0x1c   :  { %165 = vmatprep.subr.mxu0 %v18_v14 }
  0x1d   :  { %166 = vmatpush3.msra.mxu0 %v18_v14 }
  0x1e   :  { %167 = vmatprep.subr.mxu0 %v17_v15 }
  0x1f   :  { %168 = vmatpush3.msra.mxu0 %v17_v15 }
  0x20   :  { %169 = vmatprep.subr.mxu0 %v16_v16 }
  0x21   :  { %170 = vmatpush3.msra.mxu0 %v16_v16 }
  0x22   :  { %172 = vmatmul.mubr.f32.vlgmr.msra.gmra.mxu0 %v15_v17 }
  0xe2   :  { %v173_v19 = vpop.f32.mrf.mxu0 }
  0xe3   :  { %v111_v20 = vadd.f32 %v173_v19, %v120_v18 }
  0xe4   :  { %v105_v21 = vpop.f32.mrf.mxu0 }
  0xe5   :  { %115 = vst [vmem:[%s260_s3 + $0x8] sm:$0xff] %v111_v20  ;;  %v106_v22 = vadd.f32 %v120_v18, %v105_v21 }
  0xe7   :  { %114 = vst [vmem:[%s260_s3] sm:$0xff] %v106_v22 }

</bundles_post_ra>
